<compile_context>
chip_gen: v6e
topology: v6e:2x2x1
jax: 0.10.0
libtpu: 0.0.40
codegen_flags: <defaults>
</compile_context>

<pallas_src>
import jax
import jax.numpy as jnp
import numpy as np
from jax.experimental import pallas as pl
from jax.experimental.pallas import tpu as pltpu

_LANES = 128


def _balance_bce_kernel(pred_ref, gt_ref, mask_ref, loss_ref, part_ref):
    # All arithmetic in f32 (v5e has no bf16 VPU/EUP); inputs may be narrow.
    pred = pred_ref[...].astype(jnp.float32)
    gt = gt_ref[...].astype(jnp.float32)
    mask = mask_ref[...].astype(jnp.float32)

    # PyTorch binary_cross_entropy(reduction='none'), log clamped at -100.
    # Kept in the exact two-log form so soft (non-binary) gt stays correct;
    # the kernel is HBM-bound, so the extra EUP log is hidden under DMA.
    log_p = jnp.maximum(jnp.log(pred), -100.0)
    log_1mp = jnp.maximum(jnp.log(1.0 - pred), -100.0)
    loss = -(gt * log_p + (1.0 - gt) * log_1mp)

    # positive = (gt * mask).bool() ; negative = ((1 - gt) * mask).bool()
    pos = ((gt * mask) != 0.0).astype(jnp.float32)
    neg = (((1.0 - gt) * mask) != 0.0).astype(jnp.float32)

    loss_ref[...] = loss.astype(loss_ref.dtype)

    # Per-tile partial reductions, broadcast across the lane dim (lane-dense
    # unmasked-ish store, summed on the host side of the pallas_call).
    lane = jnp.ones((1, _LANES), dtype=jnp.float32)
    part_ref[0, 0:1, :] = jnp.sum(loss * pos) * lane   # positive loss sum
    part_ref[0, 1:2, :] = jnp.sum(pos) * lane          # positive count
    part_ref[0, 2:3, :] = jnp.sum(neg) * lane          # negative count


def _exact_topk_sum(values, k):
    """Exact sum of the k largest entries of a non-negative f32 vector.

    Radix-select on the IEEE-754 bit pattern (monotone for values >= 0):
    31 O(n) counting passes find the exact k-th largest value `tau`, then
        topk_sum = sum(v > tau) + (k - count(v > tau)) * tau
    which handles ties exactly.  Replaces the O(n log n) global sort.
    """
    bits = jax.lax.bitcast_convert_type(values, jnp.int32)

    def body(i, tau_bits):
        cand = tau_bits | jnp.left_shift(jnp.int32(1), 30 - i)
        cnt = jnp.sum((bits >= cand).astype(jnp.int32))
        return jnp.where(cnt >= k, cand, tau_bits)

    tau_bits = jax.lax.fori_loop(0, 31, body, jnp.int32(0))
    tau = jax.lax.bitcast_convert_type(tau_bits, jnp.float32)

    above = values > tau
    cnt_above = jnp.sum(above.astype(jnp.int32))
    sum_above = jnp.sum(jnp.where(above, values, 0.0))
    topk = sum_above + (k - cnt_above).astype(jnp.float32) * tau
    return jnp.where(k > 0, topk, jnp.float32(0.0))


def balance_cross_entropy_loss(pred, gt, mask, negative_ratio=3.0, eps=1e-6,
                               block_rows=1024):
    """pred: (N,1,H,W), gt: (N,1,H,W), mask: (N,H,W). Returns (scalar, (N,H,W))."""
    N, C, H, W = pred.shape
    assert C == 1
    total = N * H * W

    # Lane-dense view: flatten to (rows, 128).  block_rows multiple of 32 so
    # blocks respect (8,128)/(16,128)/(32,128) tiling for f32/bf16/int8 inputs.
    rows = pl.cdiv(total, _LANES)
    block_rows = max(32, (int(block_rows) // 32) * 32)
    tr = block_rows if rows >= block_rows else ((rows + 31) // 32) * 32
    num_tiles = pl.cdiv(rows, tr)
    rows_p = num_tiles * tr
    total_p = rows_p * _LANES

    def to_tiles(x, fill):
        flat = x.reshape(-1)
        padn = total_p - flat.shape[0]
        if padn:
            flat = jnp.concatenate([flat, jnp.full((padn,), fill, flat.dtype)])
        return flat.reshape(rows_p, _LANES)

    pred_t = to_tiles(pred, 0.5)   # 0.5 -> finite log; mask=0 keeps it out of sums
    gt_t = to_tiles(gt, 0)
    mask_t = to_tiles(mask, 0)

    tile_spec = pl.BlockSpec((tr, _LANES), lambda i: (i, 0))
    part_spec = pl.BlockSpec((1, 3, _LANES), lambda i: (i, 0, 0))

    loss_t, partials = pl.pallas_call(
        _balance_bce_kernel,
        out_shape=(
            jax.ShapeDtypeStruct((rows_p, _LANES), pred.dtype),        # BCE loss map
            jax.ShapeDtypeStruct((num_tiles, 3, _LANES), jnp.float32),  # partial sums
        ),
        grid=(num_tiles,),
        in_specs=[tile_spec, tile_spec, tile_spec],
        out_specs=(tile_spec, part_spec),
        compiler_params=pltpu.CompilerParams(
            dimension_semantics=("parallel",),
            vmem_limit_bytes=32 * 1024 * 1024),
    )(pred_t, gt_t, mask_t)

    pos_loss_sum = jnp.sum(partials[:, 0, 0])
    # Per-tile counts are exact integers in f32; sum them as int32 for exactness.
    pos_count = jnp.sum(partials[:, 1, 0].astype(jnp.int32))
    neg_total = jnp.sum(partials[:, 2, 0].astype(jnp.int32))

    # negative_count = min(negative.sum(), int(positive_count * negative_ratio))
    k = jnp.minimum(
        neg_total,
        jnp.floor(pos_count.astype(jnp.float32) * negative_ratio).astype(jnp.int32))

    # Negative-loss values, recomputed elementwise in the glue (kernel skips the
    # second map writeback).  Padded entries have mask == 0 -> value 0.
    neg_sel = ((1.0 - gt_t.astype(jnp.float32)) * mask_t.astype(jnp.float32)) != 0.0
    neg_vals = jnp.where(neg_sel, loss_t.astype(jnp.float32), 0.0).reshape(-1)

    # TODO(synk): torch.topk with data-dependent k has no direct Pallas
    # equivalent; done here as an exact radix-select threshold search in JAX.
    topk_neg_sum = _exact_topk_sum(neg_vals, k)

    negative_count = k.astype(jnp.float32)
    balance_loss = (pos_loss_sum + topk_neg_sum) / (
        pos_count.astype(jnp.float32) + negative_count + eps)
    balance_loss = balance_loss * 5.0

    loss = loss_t.reshape(-1)[:total].reshape(N, H, W)
    return balance_loss, loss


if __name__ == "__main__":
    key = jax.random.PRNGKey(0)
    k1, k2, k3 = jax.random.split(key, 3)

    N, C, H, W = 2, 1, 16, 16
    pred = jax.nn.sigmoid(jax.random.normal(k1, (N, C, H, W), dtype=jnp.float32))
    # Narrow dtypes for gt/mask (binary -> exact in bf16); wrapper never upcasts
    # in HBM, the kernel casts after load.
    gt = (jax.random.uniform(k2, (N, C, H, W)) > 0.5).astype(jnp.bfloat16)
    mask = (jax.random.uniform(k3, (N, H, W)) > 0.3).astype(jnp.bfloat16)

    fn = jax.jit(balance_cross_entropy_loss)
    balance_loss, loss = fn(pred, gt, mask)
    jax.block_until_ready((balance_loss, loss))

    assert balance_loss.shape == ()
    assert loss.shape == (N, H, W)

    # Pure-JAX reference (full sort) sanity check.
    def reference(pred, gt, mask, ratio=3.0, eps=1e-6):
        p = pred[:, 0].astype(jnp.float32)
        g = gt[:, 0].astype(jnp.float32)
        m = mask.astype(jnp.float32)
        loss = -(g * jnp.maximum(jnp.log(p), -100.0)
                 + (1.0 - g) * jnp.maximum(jnp.log(1.0 - p), -100.0))
        pos = (g * m) != 0.0
        neg = ((1.0 - g) * m) != 0.0
        pc = jnp.sum(pos)
        nt = jnp.sum(neg)
        kk = jnp.minimum(nt, jnp.floor(pc * ratio))
        negloss = jnp.where(neg, loss, 0.0).reshape(-1)
        srt = jnp.sort(negloss)[::-1]
        idx = jnp.arange(srt.shape[0], dtype=jnp.float32)
        tk = jnp.sum(jnp.where(idx < kk, srt, 0.0))
        bl = (jnp.sum(jnp.where(pos, loss, 0.0)) + tk) / (pc + kk + eps) * 5.0
        return bl, loss

    ref_bl, ref_loss = reference(pred, gt, mask)
    np.testing.assert_allclose(np.asarray(balance_loss), np.asarray(ref_bl),
                               rtol=2e-3, atol=1e-5)
    np.testing.assert_allclose(np.asarray(loss), np.asarray(ref_loss),
                               rtol=1e-5, atol=1e-5)

    print("KERNEL_OK")
</pallas_src>

<mosaic_0001>
module attributes {stable_mosaic.version = 11 : i64} {
  func.func @_balance_bce_kernel(%arg0: i32, %arg1: memref<32x128xf32, #tpu.memory_space<vmem>>, %arg2: memref<32x128xbf16, #tpu.memory_space<vmem>>, %arg3: memref<32x128xbf16, #tpu.memory_space<vmem>>, %arg4: memref<32x128xf32, #tpu.memory_space<vmem>>, %arg5: memref<1x3x128xf32, #tpu.memory_space<vmem>>) attributes {dimension_semantics = [#tpu.dimension_semantics<parallel>], iteration_bounds = array<i64: 1>, scalar_prefetch = 0 : i64, scratch_operands = 0 : i64, tpu.core_type = #tpu.core_type<tc>, window_params = [{transform_indices = @transform_0, window_bounds = array<i64: 32, 128>}, {transform_indices = @transform_1, window_bounds = array<i64: 32, 128>}, {transform_indices = @transform_2, window_bounds = array<i64: 32, 128>}, {transform_indices = @transform_3, window_bounds = array<i64: 32, 128>}, {transform_indices = @transform_4, window_bounds = array<i64: 1, 3, 128>}]} {
    %c0 = arith.constant 0 : index
    %c0_0 = arith.constant 0 : index
    %0 = vector.load %arg1[%c0, %c0_0] : memref<32x128xf32, #tpu.memory_space<vmem>>, vector<32x128xf32>
    %c0_1 = arith.constant 0 : index
    %c0_2 = arith.constant 0 : index
    %1 = vector.load %arg2[%c0_1, %c0_2] : memref<32x128xbf16, #tpu.memory_space<vmem>>, vector<32x128xbf16>
    %2 = arith.extf %1 : vector<32x128xbf16> to vector<32x128xf32>
    %c0_3 = arith.constant 0 : index
    %c0_4 = arith.constant 0 : index
    %3 = vector.load %arg3[%c0_3, %c0_4] : memref<32x128xbf16, #tpu.memory_space<vmem>>, vector<32x128xbf16>
    %4 = arith.extf %3 : vector<32x128xbf16> to vector<32x128xf32>
    %5 = math.log %0 : vector<32x128xf32>
    %cst = arith.constant -1.000000e+02 : f32
    %6 = vector.broadcast %cst : f32 to vector<32x128xf32>
    %7 = arith.maximumf %5, %6 : vector<32x128xf32>
    %cst_5 = arith.constant 1.000000e+00 : f32
    %8 = vector.broadcast %cst_5 : f32 to vector<32x128xf32>
    %9 = arith.subf %8, %0 : vector<32x128xf32>
    %10 = math.log %9 : vector<32x128xf32>
    %cst_6 = arith.constant -1.000000e+02 : f32
    %11 = vector.broadcast %cst_6 : f32 to vector<32x128xf32>
    %12 = arith.maximumf %10, %11 : vector<32x128xf32>
    %13 = arith.mulf %2, %7 : vector<32x128xf32>
    %cst_7 = arith.constant 1.000000e+00 : f32
    %14 = vector.broadcast %cst_7 : f32 to vector<32x128xf32>
    %15 = arith.subf %14, %2 : vector<32x128xf32>
    %16 = arith.mulf %15, %12 : vector<32x128xf32>
    %17 = arith.addf %13, %16 : vector<32x128xf32>
    %cst_8 = arith.constant 0.000000e+00 : f32
    %18 = vector.broadcast %cst_8 : f32 to vector<32x128xf32>
    %19 = arith.subf %18, %17 : vector<32x128xf32>
    %20 = arith.mulf %2, %4 : vector<32x128xf32>
    %cst_9 = arith.constant 0.000000e+00 : f32
    %21 = vector.broadcast %cst_9 : f32 to vector<32x128xf32>
    %22 = arith.cmpf one, %20, %21 : vector<32x128xf32>
    %23 = arith.extui %22 : vector<32x128xi1> to vector<32x128xi32>
    %24 = arith.sitofp %23 : vector<32x128xi32> to vector<32x128xf32>
    %cst_10 = arith.constant 1.000000e+00 : f32
    %25 = vector.broadcast %cst_10 : f32 to vector<32x128xf32>
    %26 = arith.subf %25, %2 : vector<32x128xf32>
    %27 = arith.mulf %26, %4 : vector<32x128xf32>
    %cst_11 = arith.constant 0.000000e+00 : f32
    %28 = vector.broadcast %cst_11 : f32 to vector<32x128xf32>
    %29 = arith.cmpf one, %27, %28 : vector<32x128xf32>
    %30 = arith.extui %29 : vector<32x128xi1> to vector<32x128xi32>
    %31 = arith.sitofp %30 : vector<32x128xi32> to vector<32x128xf32>
    %c0_12 = arith.constant 0 : index
    %c0_13 = arith.constant 0 : index
    %32 = vector.load %arg4[%c0_12, %c0_13] : memref<32x128xf32, #tpu.memory_space<vmem>>, vector<32x128xf32>
    tpu.vector_store %arg4[%c0_12, %c0_13], %19 {strides = array<i32>} : memref<32x128xf32, #tpu.memory_space<vmem>>, vector<32x128xf32>,
    %cst_14 = arith.constant 1.000000e+00 : f32
    %33 = vector.broadcast %cst_14 : f32 to vector<1x128xf32>
    %34 = arith.mulf %19, %24 : vector<32x128xf32>
    %35 = vector.shape_cast %34 : vector<32x128xf32> to vector<1x32x128xf32>
    %cst_15 = arith.constant dense<0.000000e+00> : vector<1xf32>
    %36 = vector.multi_reduction <add>, %35, %cst_15 [1, 2] : vector<1x32x128xf32> to vector<1xf32>
    %37 = vector.shape_cast %36 : vector<1xf32> to vector<1x1x1xf32>
    %38 = vector.extract %37[0, 0, 0] : f32 from vector<1x1x1xf32>
    %39 = vector.broadcast %38 : f32 to vector<1x128xf32>
    %40 = arith.mulf %39, %33 : vector<1x128xf32>
    %c0_16 = arith.constant 0 : index
    %c0_17 = arith.constant 0 : index
    %c0_18 = arith.constant 0 : index
    %41 = vector.load %arg5[%c0_16, %c0_17, %c0_18] : memref<1x3x128xf32, #tpu.memory_space<vmem>>, vector<1x1x128xf32>
    %42 = vector.shape_cast %41 : vector<1x1x128xf32> to vector<1x128xf32>
    %43 = vector.shape_cast %40 : vector<1x128xf32> to vector<1x1x128xf32>
    tpu.vector_store %arg5[%c0_16, %c0_17, %c0_18], %43 {strides = array<i32>} : memref<1x3x128xf32, #tpu.memory_space<vmem>>, vector<1x1x128xf32>,
    %44 = vector.shape_cast %24 : vector<32x128xf32> to vector<1x32x128xf32>
    %cst_19 = arith.constant dense<0.000000e+00> : vector<1xf32>
    %45 = vector.multi_reduction <add>, %44, %cst_19 [1, 2] : vector<1x32x128xf32> to vector<1xf32>
    %46 = vector.shape_cast %45 : vector<1xf32> to vector<1x1x1xf32>
    %47 = vector.extract %46[0, 0, 0] : f32 from vector<1x1x1xf32>
    %48 = vector.broadcast %47 : f32 to vector<1x128xf32>
    %49 = arith.mulf %48, %33 : vector<1x128xf32>
    %c0_20 = arith.constant 0 : index
    %c1 = arith.constant 1 : index
    %c0_21 = arith.constant 0 : index
    %50 = vector.load %arg5[%c0_20, %c1, %c0_21] : memref<1x3x128xf32, #tpu.memory_space<vmem>>, vector<1x1x128xf32>
    %51 = vector.shape_cast %50 : vector<1x1x128xf32> to vector<1x128xf32>
    %52 = vector.shape_cast %49 : vector<1x128xf32> to vector<1x1x128xf32>
    tpu.vector_store %arg5[%c0_20, %c1, %c0_21], %52 {strides = array<i32>} : memref<1x3x128xf32, #tpu.memory_space<vmem>>, vector<1x1x128xf32>,
    %53 = vector.shape_cast %31 : vector<32x128xf32> to vector<1x32x128xf32>
    %cst_22 = arith.constant dense<0.000000e+00> : vector<1xf32>
    %54 = vector.multi_reduction <add>, %53, %cst_22 [1, 2] : vector<1x32x128xf32> to vector<1xf32>
    %55 = vector.shape_cast %54 : vector<1xf32> to vector<1x1x1xf32>
    %56 = vector.extract %55[0, 0, 0] : f32 from vector<1x1x1xf32>
    %57 = vector.broadcast %56 : f32 to vector<1x128xf32>
    %58 = arith.mulf %57, %33 : vector<1x128xf32>
    %c0_23 = arith.constant 0 : index
    %c2 = arith.constant 2 : index
    %c0_24 = arith.constant 0 : index
    %59 = vector.load %arg5[%c0_23, %c2, %c0_24] : memref<1x3x128xf32, #tpu.memory_space<vmem>>, vector<1x1x128xf32>
    %60 = vector.shape_cast %59 : vector<1x1x128xf32> to vector<1x128xf32>
    %61 = vector.shape_cast %58 : vector<1x128xf32> to vector<1x1x128xf32>
    tpu.vector_store %arg5[%c0_23, %c2, %c0_24], %61 {strides = array<i32>} : memref<1x3x128xf32, #tpu.memory_space<vmem>>, vector<1x1x128xf32>,
    return
  }
  func.func @transform_0(%arg0: i32) -> (i32, i32) {
    %c0_i32 = arith.constant 0 : i32
    %c0_i32_0 = arith.constant 0 : i32
    return %arg0, %c0_i32 : i32, i32
  }
  func.func @transform_1(%arg0: i32) -> (i32, i32) {
    %c0_i32 = arith.constant 0 : i32
    %c0_i32_0 = arith.constant 0 : i32
    return %arg0, %c0_i32 : i32, i32
  }
  func.func @transform_2(%arg0: i32) -> (i32, i32) {
    %c0_i32 = arith.constant 0 : i32
    %c0_i32_0 = arith.constant 0 : i32
    return %arg0, %c0_i32 : i32, i32
  }
  func.func @transform_3(%arg0: i32) -> (i32, i32) {
    %c0_i32 = arith.constant 0 : i32
    %c0_i32_0 = arith.constant 0 : i32
    return %arg0, %c0_i32 : i32, i32
  }
  func.func @transform_4(%arg0: i32) -> (i32, i32, i32) {
    %c0_i32 = arith.constant 0 : i32
    %c0_i32_0 = arith.constant 0 : i32
    %c0_i32_1 = arith.constant 0 : i32
    return %arg0, %c0_i32, %c0_i32_0 : i32, i32, i32
  }
}

</mosaic_0001>

<bundles_post_ra>
// kernel: balance_cross_entropy_loss.1
= control target key start
LH: loop header
LB: loop body
LE: loop exit
PB: predicated region body
PF: predicated region fallthrough
CT: control target
= control target key end

     0   :  { %v223_v25 = vmov 0.0   ;;  %s350_s1 = inlined_call_operand.vmem [shape: bf16[32,128], index: 1, kind: input, shape index: {}]   ;;  %s351_s2 = inlined_call_operand.vmem [shape: bf16[32,128], index: 2, kind: input, shape index: {}]   ;;  %s352_s0 = inlined_call_operand.vmem [shape: f32[32,128], index: 0, kind: input, shape index: {}]   ;;  %s353_s3 = inlined_call_operand.vmem [shape: f32[32,128], index: 3, kind: output, shape index: {0}]   ;;  %s354_s4 = inlined_call_operand.vmem [shape: f32[1,3,128], index: 4, kind: output, shape index: {1}]  }
   0x1   :  { %v183_v0 = vld [vmem:[%s350_s1] sm:$0xff]   ;;  %v198_v1 = vld [vmem:[%s350_s1 + $0x8] sm:$0xff]   ;;  %v18_v22 = vld [vmem:[%s352_s0 + $0x10] sm:$0xff] }
   0x2   :  { %v258_v2 = vld [vmem:[%s351_s2] sm:$0xff]   ;;  %v260_v3 = vunpack.c.l.bf16 %v183_v0  ;;  %v262_v4 = vunpack.c.h.bf16 %v183_v0  ;;  %v264_v5 = vunpack.c.l.bf16 %v198_v1  ;;  %v266_v6 = vunpack.c.h.bf16 %v198_v1  ;;  %v271_v7 = vld [vmem:[%s351_s2 + $0x8] sm:$0xff]   ;;  %v19_v24 = vld [vmem:[%s352_s0 + $0x18] sm:$0xff] }
   0x3   :  { %v192_v8 = vunpack.c.l.bf16 %v258_v2  ;;  %v193_v9 = vunpack.c.h.bf16 %v258_v2  ;;  %v196_v10 = vunpack.c.l.bf16 %v271_v7  ;;  %v197_v11 = vunpack.c.h.bf16 %v271_v7  ;;  %v16_v16 = vld [vmem:[%s352_s0] sm:$0xff]  ;;  %v17_v21 = vld [vmem:[%s352_s0 + $0x8] sm:$0xff] }
   0x4   :  { %v68_v12 = vsub.f32 1.0, %v260_v3  ;;  %v69_v13 = vsub.f32 1.0, %v262_v4  ;;  %v70_v14 = vsub.f32 1.0, %v264_v5  ;;  %v71_v15 = vsub.f32 1.0, %v266_v6 }
   0x5   :  { %207 = vlog2.f32 %v16_v16  ;;  %v48_v23 = vsub.f32 1.0, %v16_v16  ;;  %v49_v29 = vsub.f32 1.0, %v17_v21  ;;  %v50_v31 = vsub.f32 1.0, %v18_v22 }
   0x6   :  { %v100_v17 = vmul.f32 %v192_v8, %v68_v12  ;;  %v101_v18 = vmul.f32 %v193_v9, %v69_v13  ;;  %v102_v19 = vmul.f32 %v196_v10, %v70_v14  ;;  %v103_v20 = vmul.f32 %v197_v11, %v71_v15 }
   0x7   :  { %209 = vlog2.f32 %v17_v21  ;;  %v51_v33 = vsub.f32 1.0, %v19_v24  ;;  %v84_v50 = vmul.f32 %v192_v8, %v260_v3  ;;  %v85_v54 = vmul.f32 %v193_v9, %v262_v4 }
   0x8   :  { %vm104_vm0 = vcmp.ne.f32.partialorder %v100_v17, 0.0  ;;  %vm105_vm1 = vcmp.ne.f32.partialorder %v101_v18, 0.0  ;;  %vm106_vm2 = vcmp.ne.f32.partialorder %v102_v19, 0.0  ;;  %vm107_vm3 = vcmp.ne.f32.partialorder %v103_v20, 0.0 }
   0x9   :  { %v178_v26 = vsel %vm104_vm0, 1.0, %v223_v25  ;;  %v179_v27 = vsel %vm105_vm1, 1.0, %v223_v25  ;;  %v180_v28 = vsel %vm106_vm2, 1.0, %v223_v25  ;;  %211 = vlog2.f32 %v18_v22 }
   0xa   :  { %v152_v30 = vadd.f32 %v179_v27, %v178_v26  ;;  %v181_v32 = vsel %vm107_vm3, 1.0, %v223_v25  ;;  %213 = vlog2.f32 %v19_v24  ;;  %v86_v59 = vmul.f32 %v196_v10, %v264_v5 }
   0xb   :  { %215 = vlog2.f32 %v48_v23  ;;  %v87_v63 = vmul.f32 %v197_v11, %v266_v6  ;;  %vm88_vm4 = vcmp.ne.f32.partialorder %v84_v50, 0.0  ;;  %vm89_vm5 = vcmp.ne.f32.partialorder %v85_v54, 0.0 }
   0xc   :  { %v153_v34 = vadd.f32 %v180_v28, %v152_v30  ;;  %217 = vlog2.f32 %v49_v29  ;;  %vm90_vm6 = vcmp.ne.f32.partialorder %v86_v59, 0.0  ;;  %v175_v19 = vsel %vm89_vm5, 1.0, %v223_v25 }
   0xd   :  { %219 = vlog2.f32 %v50_v31  ;;  %vm91_vm7 = vcmp.ne.f32.partialorder %v87_v63, 0.0 }
   0xe   :  { %v154_v35 = vadd.f32 %v181_v32, %v153_v34  ;;  %221 = vlog2.f32 %v51_v33 }
  0x10   :  { %155 = vadd.xlane.f32.xlu1 %v154_v35 }
  0x12   :  { %v208_v36 = vpop.eup %207 }
  0x13   :  { %v37_v38 = vmul.f32 0.6931472, %v208_v36 }
  0x14   :  { %v210_v37 = vpop.eup %209 }
  0x15   :  { %v39_v39 = vmul.f32 0.6931472, %v210_v37  ;;  %v44_v43 = vmax.f32 %v37_v38, -100.0 }
  0x16   :  { %v212_v40 = vpop.eup %211 }
  0x17   :  { %v214_v41 = vpop.eup %213  ;;  %v41_v42 = vmul.f32 0.6931472, %v212_v40  ;;  %v45_v46 = vmax.f32 %v39_v39, -100.0  ;;  %v64_v58 = vmul.f32 %v260_v3, %v44_v43  ;;  %v174_v3 = vsel %vm88_vm4, 1.0, %v223_v25 }
  0x18   :  { %v216_v44 = vpop.eup %215  ;;  %v43_v45 = vmul.f32 0.6931472, %v214_v41  ;;  %v138_v22 = vadd.f32 %v175_v19, %v174_v3 }
  0x19   :  { %v218_v47 = vpop.eup %217  ;;  %v46_v48 = vmax.f32 %v41_v42, -100.0  ;;  %v53_v49 = vmul.f32 0.6931472, %v216_v44  ;;  %v65_v62 = vmul.f32 %v262_v4, %v45_v46 }
  0x1a   :  { %v220_v51 = vpop.eup %219  ;;  %v47_v52 = vmax.f32 %v43_v45, -100.0  ;;  %v55_v53 = vmul.f32 0.6931472, %v218_v47 }
  0x1b   :  { %v222_v55 = vpop.eup %221  ;;  %v57_v56 = vmul.f32 0.6931472, %v220_v51  ;;  %v60_v57 = vmax.f32 %v53_v49, -100.0  ;;  %v66_v1 = vmul.f32 %v264_v5, %v46_v48  ;;  %v177_v5 = vsel %vm91_vm7, 1.0, %v223_v25 }
  0x1c   :  { %v59_v60 = vmul.f32 0.6931472, %v222_v55  ;;  %v61_v61 = vmax.f32 %v55_v53, -100.0  ;;  %v67_v9 = vmul.f32 %v266_v6, %v47_v52 }
  0x1d   :  { %v62_v0 = vmax.f32 %v57_v56, -100.0  ;;  %v72_v2 = vmul.f32 %v68_v12, %v60_v57 }
  0x1e   :  { %v63_v8 = vmax.f32 %v59_v60, -100.0  ;;  %v73_v10 = vmul.f32 %v69_v13, %v61_v61  ;;  %v176_v13 = vsel %vm90_vm6, 1.0, %v223_v25 }
  0x1f   :  { %v74_v16 = vmul.f32 %v70_v14, %v62_v0  ;;  %v76_v17 = vadd.f32 %v72_v2, %v64_v58  ;;  %v139_v27 = vadd.f32 %v176_v13, %v138_v22 }
  0x20   :  { %v75_v7 = vmul.f32 %v71_v15, %v63_v8  ;;  %v77_v11 = vadd.f32 %v73_v10, %v65_v62 }
  0x21   :  { %v78_v12 = vadd.f32 %v74_v16, %v66_v1  ;;  %v80_v18 = vsub.f32 0.0, %v76_v17  ;;  %v140_v29 = vadd.f32 %v177_v5, %v139_v27 }
  0x22   :  { %v79_v20 = vadd.f32 %v75_v7, %v67_v9  ;;  %v81_v4 = vsub.f32 0.0, %v77_v11 }
  0x23   :  { %v82_v21 = vsub.f32 0.0, %v78_v12  ;;  %v120_v14 = vmul.f32 %v174_v3, %v80_v18  ;;  %116 = vst [vmem:[%s353_s3] sm:$0xff] %v80_v18 }
  0x24   :  { %v83_v6 = vsub.f32 0.0, %v79_v20  ;;  %117 = vst [vmem:[%s353_s3 + $0x8] sm:$0xff] %v81_v4  ;;  %v121_v15 = vmul.f32 %v175_v19, %v81_v4 }
  0x25   :  { %118 = vst [vmem:[%s353_s3 + $0x10] sm:$0xff] %v82_v21  ;;  %v122_v23 = vmul.f32 %v176_v13, %v82_v21 }
  0x26   :  { %119 = vst [vmem:[%s353_s3 + $0x18] sm:$0xff] %v83_v6  ;;  %v123_v24 = vmul.f32 %v177_v5, %v83_v6  ;;  %v124_v25 = vadd.f32 %v121_v15, %v120_v14 }
  0x28   :  { %v125_v26 = vadd.f32 %v124_v25, %v122_v23 }
  0x2a   :  { %v126_v28 = vadd.f32 %v125_v26, %v123_v24 }
  0x2c   :  { %127 = vadd.xlane.f32.xlu0 %v126_v28 }
  0x30   :  { %141 = vadd.xlane.f32.xlu0 %v140_v29 }
  0x99   :  { %v156_v30 = vpop.xlane.xlu1 %155 }
  0x9a   :  { %v157_v31 = vrot.slane %v156_v30, 4 }
  0x9c   :  { %v158_v32 = vadd.f32 %v157_v31, %v156_v30 }
  0x9e   :  { %v159_v36 = vrot.slane %v158_v32, 2 }
  0xa0   :  { %v160_v42 = vadd.f32 %v159_v36, %v158_v32 }
  0xa2   :  { %v161_v47 = vrot.slane %v160_v42, 1 }
  0xa4   :  { %v162_v50 = vadd.f32 %v161_v47, %v160_v42 }
  0xb5   :  { %v128_v33 = vpop.xlane.xlu0 %127 }
  0xb6   :  { %v129_v34 = vrot.slane %v128_v33, 4 }
  0xb8   :  { %v130_v35 = vadd.f32 %v129_v34, %v128_v33 }
  0xb9   :  { %v142_v37 = vpop.xlane.xlu0 %141 }
  0xba   :  { %v131_v38 = vrot.slane %v130_v35, 2  ;;  %v143_v39 = vrot.slane %v142_v37, 4 }
  0xbc   :  { %v144_v40 = vadd.f32 %v143_v39, %v142_v37  ;;  %v132_v41 = vadd.f32 %v131_v38, %v130_v35 }
  0xbe   :  { %v145_v43 = vrot.slane %v144_v40, 2  ;;  %v133_v44 = vrot.slane %v132_v41, 1 }
  0xc0   :  { %v146_v45 = vadd.f32 %v145_v43, %v144_v40  ;;  %v134_v46 = vadd.f32 %v133_v44, %v132_v41 }
  0xc2   :  { %200 = vpush %v134_v46  ;;  %v147_v48 = vrot.slane %v146_v45, 1 }
  0xc4   :  { %v148_v49 = vadd.f32 %v147_v48, %v146_v45 }
  0xc6   :  { %202 = vpush %v148_v49 }
  0xc7   :  { %204 = vpush %v162_v50 }
  0xf3   :  { %s201_s3 = spop %200 }
  0xf4   :  { %v136_v51 = vstv %s201_s3 }
  0xf5   :  { %137 = vst [vmem:[%s354_s4] sm:$0x1] %v136_v51 }
  0xf7   :  { %s203_s12 = spop %202 }
  0xf8   :  { %v150_v52 = vstv %s203_s12  ;;  %s205_s13 = spop %204 }
  0xf9   :  { %151 = vst [vmem:[%s354_s4 + $0x1] sm:$0x1] %v150_v52  ;;  %v164_v53 = vstv %s205_s13 }
  0xfa   :  { %165 = vst [vmem:[%s354_s4 + $0x2] sm:$0x1] %v164_v53 }

</bundles_post_ra>
